<compile_context>
chip_gen: v7x
topology: tpu7x:2x2x1
jax: 0.10.0
libtpu: 0.0.40
codegen_flags: <defaults>
</compile_context>

<pallas_src>
import jax
import jax.numpy as jnp
from jax.experimental import pallas as pl
from jax.experimental.pallas import tpu as pltpu


# ----------------------------- Pallas kernels ------------------------------

def _conv_tap_kernel(a_ref, w_ref, b_ref, o_ref, acc_ref):
    # grid = (M_tiles, 9 taps); the tap axis is the innermost reduction axis.
    # a: (1, TM, Cin) bf16   w: (1, Cin, Cout_p) bf16   b: (1, Cout_p) f32
    # o: (TM, Cout_p)        acc: (TM, Cout_p) f32 scratch
    k = pl.program_id(1)

    @pl.when(k == 0)
    def _():
        # Fold the bias into the accumulator init (saves a separate VPU add).
        acc_ref[...] = jnp.broadcast_to(b_ref[...], acc_ref.shape)

    acc_ref[...] += jnp.dot(a_ref[0], w_ref[0],
                            preferred_element_type=jnp.float32)

    @pl.when(k == pl.num_programs(1) - 1)
    def _():
        o_ref[...] = acc_ref[...].astype(o_ref.dtype)


def _avgpool_kernel(x_ref, o_ref):
    # x: (TB, 2, Wo, 2*C)  ->  o: (TB, Wo, C)
    x = x_ref[...]
    s = x[:, 0, :, :] + x[:, 1, :, :]          # sum over the h-pair
    C = o_ref.shape[-1]
    o_ref[...] = ((s[:, :, :C] + s[:, :, C:]) * 0.25).astype(o_ref.dtype)


# ------------------------------ wrappers ------------------------------------

def conv3x3_stride2_pallas(x_nchw, weight_oihw, bias, padding=1):
    """Conv2d(channels, out_channels, k=3, stride=2, padding=padding) in NCHW."""
    N, Cin, H, W = x_nchw.shape
    Cout = weight_oihw.shape[0]
    stride = 2
    Ho = (H + 2 * padding - 3) // stride + 1
    Wo = (W + 2 * padding - 3) // stride + 1
    M = N * Ho * Wo

    x = jnp.transpose(x_nchw, (0, 2, 3, 1))                       # NHWC (glue)
    xp = jnp.pad(x, ((0, 0), (padding, padding), (padding, padding), (0, 0)))

    # Per-tap slabs stacked on a leading tap axis: (9, M, Cin), cast to bf16.
    taps = []
    for kh in range(3):
        for kw in range(3):
            patch = xp[:, kh:kh + stride * Ho:stride,
                       kw:kw + stride * Wo:stride, :]
            taps.append(patch.reshape(M, Cin))
    a = jnp.stack(taps, axis=0).astype(jnp.bfloat16)              # (9, M, Cin)

    # Weight: (Cout, Cin, kh, kw) -> (kh, kw, Cin, Cout) -> (9, Cin, Cout),
    # padded to a lane-dense Cout, bf16.
    Cout_p = ((Cout + 127) // 128) * 128
    w = jnp.transpose(weight_oihw, (2, 3, 1, 0)).reshape(9, Cin, Cout)
    w = jnp.pad(w, ((0, 0), (0, 0), (0, Cout_p - Cout))).astype(jnp.bfloat16)
    b = jnp.pad(bias.astype(jnp.float32), (0, Cout_p - Cout)).reshape(1, Cout_p)

    # Tile M (parallel axis -> megacore; enables double-buffered DMA).
    TM = 512
    if M < TM:
        TM = max(8, ((M + 7) // 8) * 8)
    Mp = pl.cdiv(M, TM) * TM
    if Mp != M:
        a = jnp.pad(a, ((0, 0), (0, Mp - M), (0, 0)))

    grid = (Mp // TM, 9)
    bytes_accessed = (a.size * 2 + w.size * 2 + b.size * 4
                      + Mp * Cout_p * jnp.dtype(x_nchw.dtype).itemsize)

    out = pl.pallas_call(
        _conv_tap_kernel,
        out_shape=jax.ShapeDtypeStruct((Mp, Cout_p), x_nchw.dtype),
        grid_spec=pltpu.PrefetchScalarGridSpec(
            num_scalar_prefetch=0,
            grid=grid,
            in_specs=[
                pl.BlockSpec((1, TM, Cin), lambda i, k: (k, i, 0)),
                pl.BlockSpec((1, Cin, Cout_p), lambda i, k: (k, 0, 0)),
                pl.BlockSpec((1, Cout_p), lambda i, k: (0, 0)),
            ],
            out_specs=pl.BlockSpec((TM, Cout_p), lambda i, k: (i, 0)),
            scratch_shapes=[pltpu.VMEM((TM, Cout_p), jnp.float32)],
        ),
        compiler_params=pltpu.CompilerParams(
            dimension_semantics=("parallel", "arbitrary"),
            vmem_limit_bytes=32 * 1024 * 1024,
        ),
        cost_estimate=pl.CostEstimate(
            flops=2 * Mp * 9 * Cin * Cout_p,
            transcendentals=0,
            bytes_accessed=int(bytes_accessed),
        ),
    )(a, w, b)

    out = out[:M, :Cout].reshape(N, Ho, Wo, Cout)
    return jnp.transpose(out, (0, 3, 1, 2))                       # back to NCHW


def avgpool2x2_pallas(x_nchw):
    """AvgPool2d(kernel_size=2, stride=2) in NCHW (floor behavior)."""
    N, C, H, W = x_nchw.shape
    Ho, Wo = H // 2, W // 2
    x = jnp.transpose(x_nchw, (0, 2, 3, 1))                       # NHWC (glue)
    x = x[:, :2 * Ho, :2 * Wo, :]                                 # floor (PyTorch)
    # Free reshape of a contiguous NHWC tensor: no 4-slab materialization.
    xr = x.reshape(N * Ho, 2, Wo, 2 * C)

    R = N * Ho
    itemsize = jnp.dtype(x.dtype).itemsize
    row_bytes = 2 * Wo * 2 * C * itemsize
    TB = max(1, min(R, (4 * 1024 * 1024) // max(row_bytes, 1)))
    Rp = pl.cdiv(R, TB) * TB
    if Rp != R:
        xr = jnp.pad(xr, ((0, Rp - R), (0, 0), (0, 0), (0, 0)))

    out = pl.pallas_call(
        _avgpool_kernel,
        out_shape=jax.ShapeDtypeStruct((Rp, Wo, C), x.dtype),
        grid=(Rp // TB,),
        in_specs=[pl.BlockSpec((TB, 2, Wo, 2 * C), lambda i: (i, 0, 0, 0))],
        out_specs=pl.BlockSpec((TB, Wo, C), lambda i: (i, 0, 0)),
        compiler_params=pltpu.CompilerParams(
            dimension_semantics=("parallel",),
            vmem_limit_bytes=32 * 1024 * 1024,
        ),
    )(xr)

    out = out[:R].reshape(N, Ho, Wo, C)
    return jnp.transpose(out, (0, 3, 1, 2))


class Downsample:
    """JAX/Pallas port of the PyTorch Downsample module (dims=2 only)."""

    def __init__(self, channels, use_conv, dims=2, out_channels=None, padding=1,
                 key=jax.random.PRNGKey(42)):
        assert dims == 2, "only dims=2 implemented"  # TODO(synk): dims=1/3 variants
        self.channels = channels
        self.out_channels = out_channels or channels
        self.use_conv = use_conv
        self.padding = padding
        if use_conv:
            kw, kb = jax.random.split(key)
            fan_in = channels * 3 * 3
            bound = 1.0 / jnp.sqrt(fan_in)
            # deterministic PyTorch-like uniform init
            self.weight = jax.random.uniform(
                kw, (self.out_channels, channels, 3, 3),
                minval=-bound, maxval=bound, dtype=jnp.float32)
            self.bias = jax.random.uniform(
                kb, (self.out_channels,), minval=-bound, maxval=bound,
                dtype=jnp.float32)
        else:
            assert self.channels == self.out_channels

    def __call__(self, x):
        assert x.shape[1] == self.channels
        if self.use_conv:
            return conv3x3_stride2_pallas(x, self.weight, self.bias, self.padding)
        return avgpool2x2_pallas(x)


# ------------------------------- main ----------------------------------------

if __name__ == "__main__":
    key = jax.random.PRNGKey(0)
    x = jax.random.normal(key, (2, 4, 16, 16), dtype=jnp.float32)  # NCHW

    # --- conv path (use_conv=True) ---
    ds_conv = Downsample(channels=4, use_conv=True, dims=2, out_channels=4, padding=1)
    y_conv = jax.block_until_ready(ds_conv(x))
    assert y_conv.shape == (2, 4, 8, 8), y_conv.shape

    # reference: XLA conv with bf16-rounded operands (kernel uses bf16 MXU
    # operands with f32 accumulation), bias in f32.
    xb = x.astype(jnp.bfloat16).astype(jnp.float32)
    wb = ds_conv.weight.astype(jnp.bfloat16).astype(jnp.float32)
    y_ref = jax.lax.conv_general_dilated(
        xb, wb, window_strides=(2, 2), padding=((1, 1), (1, 1)),
        dimension_numbers=("NCHW", "OIHW", "NCHW"))
    y_ref = y_ref + ds_conv.bias.reshape(1, -1, 1, 1)
    assert jnp.allclose(y_conv, y_ref, atol=1e-3, rtol=1e-3), (
        float(jnp.max(jnp.abs(y_conv - y_ref))))

    # --- avg-pool path (use_conv=False) ---
    ds_pool = Downsample(channels=4, use_conv=False, dims=2)
    y_pool = jax.block_until_ready(ds_pool(x))
    assert y_pool.shape == (2, 4, 8, 8), y_pool.shape
    y_pool_ref = jnp.mean(x.reshape(2, 4, 8, 2, 8, 2), axis=(3, 5))
    assert jnp.allclose(y_pool, y_pool_ref, atol=1e-5, rtol=1e-5)

    print("KERNEL_OK")
</pallas_src>

<mosaic_0001>
module attributes {stable_mosaic.version = 11 : i64} {
  func.func @_conv_tap_kernel(%arg0: i32, %arg1: i32, %arg2: memref<1x128x4xbf16, #tpu.memory_space<vmem>>, %arg3: memref<1x4x128xbf16, #tpu.memory_space<vmem>>, %arg4: memref<1x128xf32, #tpu.memory_space<vmem>>, %arg5: memref<128x128xf32, #tpu.memory_space<vmem>>, %arg6: memref<128x128xf32, #tpu.memory_space<vmem>>) attributes {dimension_semantics = [#tpu.dimension_semantics<parallel>, #tpu.dimension_semantics<arbitrary>], iteration_bounds = array<i64: 1, 9>, scalar_prefetch = 0 : i64, scratch_operands = 1 : i64, tpu.core_type = #tpu.core_type<tc>, window_params = [{transform_indices = @transform_0, window_bounds = array<i64: 1, 128, 4>}, {transform_indices = @transform_1, window_bounds = array<i64: 1, 4, 128>}, {pipeline_mode = #tpu.pipeline_mode<synchronous>, transform_indices = @transform_2, window_bounds = array<i64: 1, 128>}, {transform_indices = @transform_3, window_bounds = array<i64: 128, 128>}]} {
    %c0_i32 = arith.constant 0 : i32
    %0 = arith.cmpi eq, %arg1, %c0_i32 : i32
    %1 = arith.extui %0 : i1 to i32
    %c0_i32_0 = arith.constant 0 : i32
    %2 = arith.cmpi ne, %1, %c0_i32_0 : i32
    scf.if %2 {
      %c0_11 = arith.constant 0 : index
      %c0_12 = arith.constant 0 : index
      %14 = vector.load %arg4[%c0_11, %c0_12] : memref<1x128xf32, #tpu.memory_space<vmem>>, vector<1x128xf32>
      %15 = vector.shape_cast %14 : vector<1x128xf32> to vector<1x128xf32>
      %16 = vector.broadcast %15 : vector<1x128xf32> to vector<128x128xf32>
      %c0_13 = arith.constant 0 : index
      %c0_14 = arith.constant 0 : index
      %17 = vector.load %arg6[%c0_13, %c0_14] : memref<128x128xf32, #tpu.memory_space<vmem>>, vector<128x128xf32>
      tpu.vector_store %arg6[%c0_13, %c0_14], %16 {strides = array<i32>} : memref<128x128xf32, #tpu.memory_space<vmem>>, vector<128x128xf32>,
    } else {
    }
    %c0 = arith.constant 0 : index
    %c0_1 = arith.constant 0 : index
    %3 = vector.load %arg6[%c0, %c0_1] : memref<128x128xf32, #tpu.memory_space<vmem>>, vector<128x128xf32>
    %c0_2 = arith.constant 0 : index
    %c0_3 = arith.constant 0 : index
    %c0_4 = arith.constant 0 : index
    %4 = vector.load %arg2[%c0_2, %c0_3, %c0_4] : memref<1x128x4xbf16, #tpu.memory_space<vmem>>, vector<1x128x4xbf16>
    %5 = vector.shape_cast %4 : vector<1x128x4xbf16> to vector<128x4xbf16>
    %c0_5 = arith.constant 0 : index
    %c0_6 = arith.constant 0 : index
    %c0_7 = arith.constant 0 : index
    %6 = vector.load %arg3[%c0_5, %c0_6, %c0_7] : memref<1x4x128xbf16, #tpu.memory_space<vmem>>, vector<1x4x128xbf16>
    %7 = vector.shape_cast %6 : vector<1x4x128xbf16> to vector<4x128xbf16>
    %cst = arith.constant dense<0.000000e+00> : vector<128x128xf32>
    %8 = tpu.matmul %5, %7, %cst {dimension_numbers = #tpu.dot_dimension_numbers<[1], [0], [0], [1], [0, 0, 1, 1], [], []>} : vector<128x4xbf16>, vector<4x128xbf16>, vector<128x128xf32> -> vector<128x128xf32>
    %9 = arith.addf %3, %8 : vector<128x128xf32>
    %c0_8 = arith.constant 0 : index
    %c0_9 = arith.constant 0 : index
    %10 = vector.load %arg6[%c0_8, %c0_9] : memref<128x128xf32, #tpu.memory_space<vmem>>, vector<128x128xf32>
    tpu.vector_store %arg6[%c0_8, %c0_9], %9 {strides = array<i32>} : memref<128x128xf32, #tpu.memory_space<vmem>>, vector<128x128xf32>,
    %c8_i32 = arith.constant 8 : i32
    %11 = arith.cmpi eq, %arg1, %c8_i32 : i32
    %12 = arith.extui %11 : i1 to i32
    %c0_i32_10 = arith.constant 0 : i32
    %13 = arith.cmpi ne, %12, %c0_i32_10 : i32
    scf.if %13 {
      %c0_11 = arith.constant 0 : index
      %c0_12 = arith.constant 0 : index
      %14 = vector.load %arg6[%c0_11, %c0_12] : memref<128x128xf32, #tpu.memory_space<vmem>>, vector<128x128xf32>
      %c0_13 = arith.constant 0 : index
      %c0_14 = arith.constant 0 : index
      %15 = vector.load %arg5[%c0_13, %c0_14] : memref<128x128xf32, #tpu.memory_space<vmem>>, vector<128x128xf32>
      tpu.vector_store %arg5[%c0_13, %c0_14], %14 {strides = array<i32>} : memref<128x128xf32, #tpu.memory_space<vmem>>, vector<128x128xf32>,
    } else {
    }
    return
  }
  func.func @transform_0(%arg0: i32, %arg1: i32) -> (i32, i32, i32) {
    %c0_i32 = arith.constant 0 : i32
    %c0_i32_0 = arith.constant 0 : i32
    return %arg1, %arg0, %c0_i32 : i32, i32, i32
  }
  func.func @transform_1(%arg0: i32, %arg1: i32) -> (i32, i32, i32) {
    %c0_i32 = arith.constant 0 : i32
    %c0_i32_0 = arith.constant 0 : i32
    %c0_i32_1 = arith.constant 0 : i32
    return %arg1, %c0_i32, %c0_i32_0 : i32, i32, i32
  }
  func.func @transform_2(%arg0: i32, %arg1: i32) -> (i32, i32) {
    %c0_i32 = arith.constant 0 : i32
    %c0_i32_0 = arith.constant 0 : i32
    %c0_i32_1 = arith.constant 0 : i32
    return %c0_i32, %c0_i32_0 : i32, i32
  }
  func.func @transform_3(%arg0: i32, %arg1: i32) -> (i32, i32) {
    %c0_i32 = arith.constant 0 : i32
    %c0_i32_0 = arith.constant 0 : i32
    return %arg0, %c0_i32 : i32, i32
  }
}

</mosaic_0001>

<bundles_post_ra>
// kernel: tpu_custom_call.1
= control target key start
LH: loop header
LB: loop body
LE: loop exit
PB: predicated region body
PF: predicated region fallthrough
CT: control target
= control target key end

     0   :  { %8 = vsyncpa [#allocation4], 0  ;;  %s763_s12 = smov 0   ;;  %s765_s13 = smov 0   ;;  %s852_s0 = inlined_call_operand.vmem [shape: bf16[9,128,4], index: 0, kind: input, shape index: {}]   ;;  %s853_s1 = inlined_call_operand.vmem [shape: bf16[9,4,128], index: 1, kind: input, shape index: {}]   ;;  %s854_s2 = inlined_call_operand.vmem [shape: f32[1,128], index: 2, kind: input, shape index: {}]   ;;  %s855_s3 = inlined_call_operand.hbm [shape: f32[128,128], index: 3, kind: output, shape index: {}]  }
   0x1   :  { %s767_s14 = smov 0  }
   0x2 LB: > { %s583_s15 = sadd.s32 4294967295, %s738_s14   ;;  %s23_s16 = sadd.s32 1, %s734_s13  ;;  %s738_s14 = sphi %s767_s14, %s14_s14   ;;  %s734_s13 = sphi %s765_s13, %s858_s13   ;;  %s730_s12 = sphi %s763_s12, %s857_s12  }
   0x3   : > { %p24_p0 = scmp.ge.s32.totalorder %s23_s16, 9  ;;  %p586_p1 = scmp.ge.s32.totalorder %s738_s14, 1 }
   0x4   : > { %p166_p2 = scmp.lt.s32.totalorder %s738_s14, 10 }
   0x5   : > { %s860_s16 = smov (%p24_p0, %s23_s16), 0 }
   0x6   : > { %p167_p3 = pnand %p586_p1, %p166_p2 }
   0x7   : > { %p194_p4 = scmp.lt.s32.totalorder (!%p167_p3), %s730_s12, 8  ;;  %p590_p5 = scmp.ne.s32.totalorder (!%p167_p3), %s730_s12, 0 }
   0x8   : > { %170 = sbr.rel (%p167_p3) target bundleno = 291 (0x123), region = 32 }
   0xf   : > { %s195_s17 = scalar_select %p194_p4, %s730_s12, 8 }
  0x10   : > { %212 = sbr.rel (%p590_p5) target bundleno = 25 (0x19), region = 36  ;;  %v591_v0 = vld [vmem:[%s854_s2] ss:$0 sm:$0xff] (!%p590_p5) }
  0x11   : > { %s613_s18 = sshll.u32 %s195_s17, 6  ;;  %s589_s19 = sshll.u32 %s195_s17, 1  ;;  %220 = vst [vmem:[#allocation2] sm:$0xff] (!%p590_p5), %v591_v0  ;;  %221 = vst [vmem:[#allocation2 + $0x8] sm:$0xff] (!%p590_p5), %v591_v0 }
  0x12   : > { %s789_s22 = scalar_lea.vmem %s852_s0, %s613_s18  ;;  %s206_s25 = scalar_lea.vmem %s853_s1, %s589_s19  ;;  %222 = vst [vmem:[#allocation2 + $0x10] sm:$0xff] (!%p590_p5), %v591_v0  ;;  %223 = vst [vmem:[#allocation2 + $0x18] sm:$0xff] (!%p590_p5), %v591_v0 }
  0x13   : > { %224 = vst [vmem:[#allocation2 + $0x20] sm:$0xff] (!%p590_p5), %v591_v0  ;;  %225 = vst [vmem:[#allocation2 + $0x28] sm:$0xff] (!%p590_p5), %v591_v0 }
  0x14   : > { %226 = vst [vmem:[#allocation2 + $0x30] sm:$0xff] (!%p590_p5), %v591_v0  ;;  %227 = vst [vmem:[#allocation2 + $0x38] sm:$0xff] (!%p590_p5), %v591_v0 }
  0x15   : > { %228 = vst [vmem:[#allocation2 + $0x40] sm:$0xff] (!%p590_p5), %v591_v0  ;;  %229 = vst [vmem:[#allocation2 + $0x48] sm:$0xff] (!%p590_p5), %v591_v0 }
  0x16   : > { %230 = vst [vmem:[#allocation2 + $0x50] sm:$0xff] (!%p590_p5), %v591_v0  ;;  %231 = vst [vmem:[#allocation2 + $0x58] sm:$0xff] (!%p590_p5), %v591_v0 }
  0x17   : > { %232 = vst [vmem:[#allocation2 + $0x60] sm:$0xff] %v591_v0  ;;  %233 = vst [vmem:[#allocation2 + $0x68] sm:$0xff] %v591_v0 }
  0x18   : > { %234 = vst [vmem:[#allocation2 + $0x70] sm:$0xff] %v591_v0  ;;  %235 = vst [vmem:[#allocation2 + $0x78] sm:$0xff] %v591_v0 }
  0x19 PF: > { %v268_v1 = vld [vmem:[%s206_s25] sm:$0x3]  ;;  %vm334_vm0 = vcmask 1041408   ;;  %vm309_vm1 = vcmask 31744   ;;  %v680_v5 = vld [vmem:[%s789_s22 + $0x8] sm:$0xff]   ;;  %v682_v7 = vld [vmem:[%s789_s22 + $0x10] sm:$0xff]  }
  0x1a   : > { %v678_v2 = vld [vmem:[%s789_s22] sm:$0xff]   ;;  %643 = vmatprep.subr.msk.bf16.mxu0 %vm334_vm0, %v268_v1  ;;  %644 = vmatprep.subr.msk.bf16.mxu1 %vm334_vm0, %v268_v1  ;;  %v336_v3 = vsel %vm334_vm0, %v268_v1, 0  ;;  %v681_v6 = vld [vmem:[%s789_s22 + $0x28] sm:$0xff]   ;;  %v683_v8 = vld [vmem:[%s789_s22 + $0x30] sm:$0xff]   ;;  %p608_p6 = scmp.ne.s32.totalorder %s730_s12, 8 }
  0x1b   : > { %624 = vmatpush3.bf16.msra.mxu0 %v336_v3  ;;  %642 = vmatpush3.bf16.msra.mxu1 %v336_v3  ;;  %v679_v4 = vld [vmem:[%s789_s22 + $0x20] sm:$0xff]   ;;  %v684_v9 = vld [vmem:[%s789_s22 + $0x18] sm:$0xff]   ;;  %v238_v11 = vld [vmem:[#allocation2 + $0x10] sm:$0xff] }
  0x1c   : > { %625 = vmatprep.mubr.msk.bf16.mxu0 %vm309_vm1, %v678_v2  ;;  %633 = vmatprep.mubr.msk.bf16.mxu1 %vm309_vm1, %v679_v4  ;;  %v685_v10 = vld [vmem:[%s789_s22 + $0x38] sm:$0xff]   ;;  %v236_v13 = vld [vmem:[#allocation2] sm:$0xff]  ;;  %v237_v21 = vld [vmem:[#allocation2 + $0x8] sm:$0xff] }
  0x1d   : > { %v239_v16 = vld [vmem:[#allocation2 + $0x18] sm:$0xff]  ;;  %v242_v35 = vld [vmem:[#allocation2 + $0x30] sm:$0xff]  ;;  %v240_v37 = vld [vmem:[#allocation2 + $0x20] sm:$0xff] }
  0x1e   : > { %626 = vmatmul.mubr.msk.bf16.vlgmr.msra.gmra.mrb[0].mxu0 %vm309_vm1, %v680_v5  ;;  %634 = vmatmul.mubr.msk.bf16.vlgmr.msra.gmra.mrb[0].mxu1 %vm309_vm1, %v681_v6  ;;  %v244_v15 = vld [vmem:[#allocation2 + $0x40] sm:$0xff]  ;;  %v245_v26 = vld [vmem:[#allocation2 + $0x48] sm:$0xff]  ;;  %v243_v40 = vld [vmem:[#allocation2 + $0x38] sm:$0xff] }
  0x1f   : > { %629 = vmatprep.mubr.msk.bf16.mxu0 %vm309_vm1, %v682_v7  ;;  %637 = vmatprep.mubr.msk.bf16.mxu1 %vm309_vm1, %v683_v8  ;;  %v246_v12 = vld [vmem:[#allocation2 + $0x50] sm:$0xff]  ;;  %v247_v20 = vld [vmem:[#allocation2 + $0x58] sm:$0xff]  ;;  %v248_v39 = vld [vmem:[#allocation2 + $0x60] sm:$0xff] }
  0x20   : > { %v250_v36 = vld [vmem:[#allocation2 + $0x70] sm:$0xff]  ;;  %v251_v44 = vld [vmem:[#allocation2 + $0x78] sm:$0xff]  ;;  %v241_v45 = vld [vmem:[#allocation2 + $0x28] sm:$0xff] }
  0x21   : > { %v249_v50 = vld [vmem:[#allocation2 + $0x68] sm:$0xff] }
  0x26   : > { %630 = vmatmul.mubr.msk.bf16.gmra.mrb[4].mxu0 %vm309_vm1, %v684_v9  ;;  %638 = vmatmul.mubr.msk.bf16.gmra.mrb[4].mxu1 %vm309_vm1, %v685_v10 }
  0xf1   : > { %v627_v14 = vpop.f32.mrb[0].mxu0  ;;  %v635_v18 = vpop.f32.mrb[0].mxu1 }
  0xf2   : > { %v437_v17 = vadd.f32 %v627_v14, %v238_v11  ;;  %v372_v19 = vpop.f32.mrb[1].mxu0  ;;  %v445_v22 = vadd.f32 %v635_v18, %v246_v12  ;;  %v404_v24 = vpop.f32.mrb[1].mxu1 }
  0xf3   : > { %v435_v23 = vadd.f32 %v372_v19, %v236_v13  ;;  %v628_v25 = vpop.f32.mrb[2].mxu0  ;;  %v443_v27 = vadd.f32 %v404_v24, %v244_v15  ;;  %v636_v29 = vpop.f32.mrb[2].mxu1 }
  0xf4   : > { %453 = vst [vmem:[#allocation2 + $0x10] sm:$0xff] %v437_v17  ;;  %v438_v28 = vadd.f32 %v628_v25, %v239_v16  ;;  %v375_v30 = vpop.f32.mrb[3].mxu0  ;;  %461 = vst [vmem:[#allocation2 + $0x50] sm:$0xff] %v445_v22  ;;  %v446_v31 = vadd.f32 %v636_v29, %v247_v20  ;;  %v407_v33 = vpop.f32.mrb[3].mxu1 }
  0xf5   : > { %451 = vst [vmem:[#allocation2] sm:$0xff] %v435_v23  ;;  %v436_v32 = vadd.f32 %v375_v30, %v237_v21  ;;  %459 = vst [vmem:[#allocation2 + $0x40] sm:$0xff] %v443_v27  ;;  %v444_v34 = vadd.f32 %v407_v33, %v245_v26 }
  0xf6   : > { %454 = vst [vmem:[#allocation2 + $0x18] sm:$0xff] %v438_v28  ;;  %462 = vst [vmem:[#allocation2 + $0x58] sm:$0xff] %v446_v31 }
  0xf7   : > { %452 = vst [vmem:[#allocation2 + $0x8] sm:$0xff] %v436_v32  ;;  %460 = vst [vmem:[#allocation2 + $0x48] sm:$0xff] %v444_v34 }
  0xf9   : > { %v631_v38 = vpop.f32.mrb[4].mxu0  ;;  %v639_v42 = vpop.f32.mrb[4].mxu1  ;;  %470 = sbr.rel (%p608_p6) target bundleno = 265 (0x109), region = 40 }
  0xfa   : > { %v441_v41 = vadd.f32 %v631_v38, %v242_v35  ;;  %v388_v43 = vpop.f32.mrb[5].mxu0  ;;  %v449_v46 = vadd.f32 %v639_v42, %v250_v36  ;;  %v420_v48 = vpop.f32.mrb[5].mxu1 }
  0xfb   : > { %v439_v47 = vadd.f32 %v388_v43, %v240_v37  ;;  %v632_v49 = vpop.f32.mrb[6].mxu0  ;;  %v447_v51 = vadd.f32 %v420_v48, %v248_v39  ;;  %v640_v53 = vpop.f32.mrb[6].mxu1  ;;  %v473_v61 = vld [vmem:[#allocation2 + $0x10] sm:$0xff] (!%p608_p6) }
  0xfc   : > { %457 = vst [vmem:[#allocation2 + $0x30] sm:$0xff] %v441_v41  ;;  %v442_v52 = vadd.f32 %v632_v49, %v243_v40  ;;  %v391_v54 = vpop.f32.mrb[7].mxu0  ;;  %465 = vst [vmem:[#allocation2 + $0x70] sm:$0xff] %v449_v46  ;;  %v450_v55 = vadd.f32 %v640_v53, %v251_v44  ;;  %v423_v57 = vpop.f32.mrb[7].mxu1  ;;  %v471_v59 = vld [vmem:[#allocation2] sm:$0xff] (!%p608_p6)  ;;  %v481_v5 = vld [vmem:[#allocation2 + $0x50] sm:$0xff] (!%p608_p6) }
  0xfd   : > { %455 = vst [vmem:[#allocation2 + $0x20] sm:$0xff] %v439_v47  ;;  %v440_v56 = vadd.f32 %v391_v54, %v241_v45  ;;  %463 = vst [vmem:[#allocation2 + $0x60] sm:$0xff] %v447_v51  ;;  %v448_v58 = vadd.f32 %v423_v57, %v249_v50  ;;  %v474_v62 = vld [vmem:[#allocation2 + $0x18] sm:$0xff] (!%p608_p6)  ;;  %v479_v3 = vld [vmem:[#allocation2 + $0x40] sm:$0xff] (!%p608_p6) }
  0xfe   : > { %458 = vst [vmem:[#allocation2 + $0x38] sm:$0xff] %v442_v52  ;;  %466 = vst [vmem:[#allocation2 + $0x78] sm:$0xff] %v450_v55  ;;  %v472_v60 = vld [vmem:[#allocation2 + $0x8] sm:$0xff] (!%p608_p6)  ;;  %v482_v6 = vld [vmem:[#allocation2 + $0x58] sm:$0xff] (!%p608_p6) }
  0xff   : > { %456 = vst [vmem:[#allocation2 + $0x28] sm:$0xff] %v440_v56  ;;  %464 = vst [vmem:[#allocation2 + $0x68] sm:$0xff] %v448_v58  ;;  %v480_v4 = vld [vmem:[#allocation2 + $0x48] sm:$0xff] (!%p608_p6) }
 0x100   : > { %487 = vst [vmem:[#allocation3] sm:$0xff] %v471_v59  ;;  %488 = vst [vmem:[#allocation3 + $0x8] sm:$0xff] %v472_v60 }
 0x101   : > { %489 = vst [vmem:[#allocation3 + $0x10] sm:$0xff] %v473_v61  ;;  %490 = vst [vmem:[#allocation3 + $0x18] sm:$0xff] %v474_v62 }
 0x102   : > { %495 = vst [vmem:[#allocation3 + $0x40] sm:$0xff] %v479_v3  ;;  %496 = vst [vmem:[#allocation3 + $0x48] sm:$0xff] %v480_v4 }
 0x103   : > { %v477_v1 = vld [vmem:[#allocation2 + $0x30] sm:$0xff]  ;;  %497 = vst [vmem:[#allocation3 + $0x50] sm:$0xff] %v481_v5  ;;  %498 = vst [vmem:[#allocation3 + $0x58] sm:$0xff] %v482_v6 }
 0x104   : > { %v475_v63 = vld [vmem:[#allocation2 + $0x20] sm:$0xff]  ;;  %493 = vst [vmem:[#allocation3 + $0x30] sm:$0xff] %v477_v1  ;;  %v485_v9 = vld [vmem:[#allocation2 + $0x70] sm:$0xff] }
 0x105   : > { %491 = vst [vmem:[#allocation3 + $0x20] sm:$0xff] %v475_v63  ;;  %v478_v2 = vld [vmem:[#allocation2 + $0x38] sm:$0xff]  ;;  %v483_v7 = vld [vmem:[#allocation2 + $0x60] sm:$0xff]  ;;  %501 = vst [vmem:[#allocation3 + $0x70] sm:$0xff] %v485_v9 }
 0x106   : > { %v476_v0 = vld [vmem:[#allocation2 + $0x28] sm:$0xff]  ;;  %494 = vst [vmem:[#allocation3 + $0x38] sm:$0xff] %v478_v2  ;;  %499 = vst [vmem:[#allocation3 + $0x60] sm:$0xff] %v483_v7  ;;  %v486_v10 = vld [vmem:[#allocation2 + $0x78] sm:$0xff] }
 0x107   : > { %492 = vst [vmem:[#allocation3 + $0x28] sm:$0xff] %v476_v0  ;;  %v484_v8 = vld [vmem:[#allocation2 + $0x68] sm:$0xff]  ;;  %502 = vst [vmem:[#allocation3 + $0x78] sm:$0xff] %v486_v10 }
 0x108   : > { %500 = vst [vmem:[#allocation3 + $0x68] sm:$0xff] %v484_v8 }
 0x109 PF: > { %p817_p7 = scmp.eq.s32.totalorder %s583_s15, 8  ;;  %s740_s29 = smov [#allocation3]  }
 0x10a   : > { %s512_s30 = sshll.u32 %s740_s29, 4  ;;  %s513_s30 = int_to_ptr.vmem [resolvable:$true] %s512_s30 }
 0x10b   : > { %s686_s4 = scalar_lea.vmem %s513_s30, 2048  ;;  %p693_p11 = scmp.lt.s32.totalorder %s513_s30, %s513_s30 }
 0x10c   : > { %p687_p8 = scmp.ne.s32.totalorder %s513_s30, %s686_s4  ;;  %p694_p12 = scmp.lt.s32.totalorder %s686_s4, %s686_s4 }
 0x10e   : > { %p688_p9 = pnand %p687_p8, %p817_p7  ;;  %p695_p13 = por %p694_p12, %p693_p11 }
 0x110   : > { %p689_p10 = pneg %p688_p9 }
 0x112   : > { %p696_p0 = pnand %p695_p13, %p689_p10 }
 0x114   : > { %699 = shalt.err (!%p696_p0)
}
 0x115   : > { %s700_s7 = scalar_lea.hbm %s855_s3, 2048 }
 0x116   : > { %p701_p1 = scmp.ne.s32.totalorder %s855_s3, %s700_s7  ;;  %p706_p4 = scmp.lt.u32.totalorder %s700_s7, %s855_s3 }
 0x118   : > { %p702_p2 = pnand %p701_p1, %p817_p7 }
 0x11a   : > { %p703_p3 = pneg %p702_p2 }
 0x11c   : > { %p708_p5 = pnand %p706_p4, %p703_p3 }
 0x11e   : > { %711 = shalt.err (!%p708_p5)
}
 0x11f   : > { %s741_s12 = smov 128   ;;  %s742_s15 = smov 8  }
 0x120   : > { %646 = dma.vmem_to_hbm [thread:$0]  (%p817_p7), %s513_s30, 2048, %s855_s3, [#allocation4], %s741_s12, %s741_s12, %s742_s15  }
 0x121   : > { %725 = dma.done.wait (%p817_p7), [#allocation4], 2048  }
 0x122   : > { %727 = vsyncadd (%p817_p7), [#allocation4], 4294965248 }
 0x123 PF: > { %s14_s14 = sadd.s32 1, %s738_s14   ;;  %s857_s12 = smov %s734_s13 }
 0x124   : > { %p11_p6 = scmp.ge.s32.totalorder %s14_s14, 11   ;;  %s858_s13 = smov %s860_s16 }
 0x126   :  { %13 = sbr.rel (!%p11_p6) target bundleno = 2 (0x2), region = 71 }
 0x12d   :  { %528 = vsyncpa [#allocation4], 1 }
 0x12e   :  { %530 = vsyncpa [#allocation4 + $0x1], 1 }

</bundles_post_ra>
